<compile_context>
chip_gen: v6e
topology: v6e:2x2x1
jax: 0.10.0
libtpu: 0.0.40
codegen_flags: <defaults>
</compile_context>

<pallas_src>
import jax
import jax.numpy as jnp
from jax import lax
from jax.experimental import pallas as pl
from jax.experimental.pallas import tpu as pltpu

EPS = 1e-5


def _process_data_kernel(x_ref, w_ref, b_ref, sel_ref, selT_ref,
                         gamma_ref, beta_ref, o_ref):
    # x_ref   : (M, Din)   VMEM, M = B*C, rows ordered b-major (row = b*C + c)
    # w_ref   : (Din, Dout) VMEM  (linear weight, transposed in wrapper)
    # b_ref   : (1, Dout)  VMEM   (linear bias)
    # sel_ref : (C, M)     VMEM   one-hot: sel[c, r] = 1 iff r % C == c
    # selT_ref: (M, C)     VMEM   transpose of sel (precomputed in wrapper)
    # gamma_ref/beta_ref: (C, 1) VMEM  BN affine params
    # o_ref   : (M, Dout)  VMEM
    M = x_ref.shape[0]
    C = sel_ref.shape[0]
    Dout = o_ref.shape[1]
    inv_n = 1.0 / float((M // C) * Dout)   # per-channel element count N = B*Dout

    # Linear layer: one big MXU matmul over all (b, c) rows + bias.
    y = jnp.dot(x_ref[...], w_ref[...], preferred_element_type=jnp.float32)
    y = y + b_ref[...]

    # One-pass BN statistics: per-row sums over Dout (lane reduction), then
    # per-channel sums via tiny selection matmuls.
    row_s1 = jnp.sum(y, axis=1, keepdims=True)        # (M, 1)
    row_s2 = jnp.sum(y * y, axis=1, keepdims=True)    # (M, 1)
    ch_s1 = jnp.dot(sel_ref[...], row_s1, preferred_element_type=jnp.float32)  # (C, 1)
    ch_s2 = jnp.dot(sel_ref[...], row_s2, preferred_element_type=jnp.float32)  # (C, 1)

    mean = ch_s1 * inv_n                                   # (C, 1)
    var = jnp.maximum(ch_s2 * inv_n - mean * mean, 0.0)    # biased variance
    scale = lax.rsqrt(var + EPS) * gamma_ref[...]          # (C, 1)
    shift = beta_ref[...] - mean * scale                   # (C, 1)

    # Broadcast per-channel scale/shift back to rows and apply fused affine.
    row_scale = jnp.dot(selT_ref[...], scale, preferred_element_type=jnp.float32)  # (M, 1)
    row_shift = jnp.dot(selT_ref[...], shift, preferred_element_type=jnp.float32)  # (M, 1)
    o_ref[...] = (y * row_scale + row_shift).astype(o_ref.dtype)


def process_data_forward(x, weight, bias, gamma, beta):
    """x: (B, C, Din) f32.  weight: (Dout, Din).  Returns (B, C, Dout, 1) f32."""
    B, C, Din = x.shape
    Dout = weight.shape[0]
    M = B * C

    x2 = x.reshape(M, Din)                         # free row-major collapse
    w_t = jnp.transpose(weight, (1, 0))            # (Din, Dout), tiny
    b2 = bias.reshape(1, Dout)
    gamma2 = gamma.reshape(C, 1).astype(jnp.float32)
    beta2 = beta.reshape(C, 1).astype(jnp.float32)

    # One-hot channel-selection matrices (row r -> channel r % C).
    row_ch = jnp.arange(M, dtype=jnp.int32) % C
    sel = (row_ch[None, :] == jnp.arange(C, dtype=jnp.int32)[:, None]
           ).astype(jnp.float32)                   # (C, M)
    selT = jnp.transpose(sel, (1, 0))              # (M, C)

    out2 = pl.pallas_call(
        _process_data_kernel,
        out_shape=jax.ShapeDtypeStruct((M, Dout), jnp.float32),
        grid_spec=pltpu.PrefetchScalarGridSpec(
            num_scalar_prefetch=0,
            grid=(1,),
            in_specs=[
                pl.BlockSpec((M, Din), lambda i: (0, 0)),
                pl.BlockSpec((Din, Dout), lambda i: (0, 0)),
                pl.BlockSpec((1, Dout), lambda i: (0, 0)),
                pl.BlockSpec((C, M), lambda i: (0, 0)),
                pl.BlockSpec((M, C), lambda i: (0, 0)),
                pl.BlockSpec((C, 1), lambda i: (0, 0)),
                pl.BlockSpec((C, 1), lambda i: (0, 0)),
            ],
            out_specs=pl.BlockSpec((M, Dout), lambda i: (0, 0)),
        ),
        compiler_params=pltpu.CompilerParams(
            dimension_semantics=("parallel",),
        ),
    )(x2, w_t, b2, sel, selT, gamma2, beta2)

    # (B*C, Dout) -> (B, C, Dout, 1): free row-major reshape (unsqueeze(3)).
    return out2.reshape(B, C, Dout, 1)


def _reference_forward(x, weight, bias, gamma, beta):
    """Pure-JAX reference mirroring the PyTorch forward (training-mode BN)."""
    y = jnp.einsum("bci,oi->bco", x, weight) + bias        # Linear
    y = y[..., None]                                       # unsqueeze(3)
    mean = jnp.mean(y, axis=(0, 2, 3), keepdims=True)
    var = jnp.mean(jnp.square(y - mean), axis=(0, 2, 3), keepdims=True)
    g = gamma.reshape(1, -1, 1, 1)
    b = beta.reshape(1, -1, 1, 1)
    return (y - mean) * lax.rsqrt(var + EPS) * g + b


if __name__ == "__main__":
    # Small shapes consistent with the module: x is (B, C, Din),
    # batch_norm_channels == C.
    B, C, Din, Dout = 2, 4, 32, 64

    key = jax.random.PRNGKey(0)
    kx, kw, kb = jax.random.split(key, 3)

    x = jax.random.normal(kx, (B, C, Din), dtype=jnp.float32)

    # Deterministic parameter init (mirrors nn.init.normal_(std=0.02) for the
    # weight and PyTorch's default uniform bias init for the linear bias).
    weight = 0.02 * jax.random.normal(kw, (Dout, Din), dtype=jnp.float32)
    bound = 1.0 / jnp.sqrt(jnp.float32(Din))
    bias = jax.random.uniform(kb, (Dout,), minval=-bound, maxval=bound,
                              dtype=jnp.float32)
    # BatchNorm2d default affine params at init.
    gamma = jnp.ones((C,), dtype=jnp.float32)
    beta = jnp.zeros((C,), dtype=jnp.float32)

    out = process_data_forward(x, weight, bias, gamma, beta)
    out = jax.block_until_ready(out)

    ref = _reference_forward(x, weight, bias, gamma, beta)
    assert out.shape == (B, C, Dout, 1), out.shape
    assert jnp.allclose(out, ref, atol=1e-5, rtol=1e-5), (
        float(jnp.max(jnp.abs(out - ref))))

    print("KERNEL_OK")
</pallas_src>

<mosaic_0001>
module attributes {stable_mosaic.version = 11 : i64} {
  func.func @_process_data_kernel(%arg0: i32, %arg1: memref<8x32xf32, #tpu.memory_space<vmem>>, %arg2: memref<32x64xf32, #tpu.memory_space<vmem>>, %arg3: memref<1x64xf32, #tpu.memory_space<vmem>>, %arg4: memref<4x8xf32, #tpu.memory_space<vmem>>, %arg5: memref<8x4xf32, #tpu.memory_space<vmem>>, %arg6: memref<4x1xf32, #tpu.memory_space<vmem>>, %arg7: memref<4x1xf32, #tpu.memory_space<vmem>>, %arg8: memref<8x64xf32, #tpu.memory_space<vmem>>) attributes {dimension_semantics = [#tpu.dimension_semantics<parallel>], iteration_bounds = array<i64: 1>, scalar_prefetch = 0 : i64, scratch_operands = 0 : i64, tpu.core_type = #tpu.core_type<tc>, window_params = [{pipeline_mode = #tpu.pipeline_mode<synchronous>, transform_indices = @transform_0, window_bounds = array<i64: 8, 32>}, {pipeline_mode = #tpu.pipeline_mode<synchronous>, transform_indices = @transform_1, window_bounds = array<i64: 32, 64>}, {pipeline_mode = #tpu.pipeline_mode<synchronous>, transform_indices = @transform_2, window_bounds = array<i64: 1, 64>}, {pipeline_mode = #tpu.pipeline_mode<synchronous>, transform_indices = @transform_3, window_bounds = array<i64: 4, 8>}, {pipeline_mode = #tpu.pipeline_mode<synchronous>, transform_indices = @transform_4, window_bounds = array<i64: 8, 4>}, {pipeline_mode = #tpu.pipeline_mode<synchronous>, transform_indices = @transform_5, window_bounds = array<i64: 4, 1>}, {pipeline_mode = #tpu.pipeline_mode<synchronous>, transform_indices = @transform_6, window_bounds = array<i64: 4, 1>}, {pipeline_mode = #tpu.pipeline_mode<synchronous>, transform_indices = @transform_7, window_bounds = array<i64: 8, 64>}]} {
    %c0 = arith.constant 0 : index
    %c0_0 = arith.constant 0 : index
    %0 = vector.load %arg1[%c0, %c0_0] : memref<8x32xf32, #tpu.memory_space<vmem>>, vector<8x32xf32>
    %c0_1 = arith.constant 0 : index
    %c0_2 = arith.constant 0 : index
    %1 = vector.load %arg2[%c0_1, %c0_2] : memref<32x64xf32, #tpu.memory_space<vmem>>, vector<32x64xf32>
    %cst = arith.constant dense<0.000000e+00> : vector<8x64xf32>
    %2 = tpu.matmul %0, %1, %cst {dimension_numbers = #tpu.dot_dimension_numbers<[1], [0], [0], [1], [0, 0, 1, 1], [], []>} : vector<8x32xf32>, vector<32x64xf32>, vector<8x64xf32> -> vector<8x64xf32>
    %c0_3 = arith.constant 0 : index
    %c0_4 = arith.constant 0 : index
    %3 = vector.load %arg3[%c0_3, %c0_4] : memref<1x64xf32, #tpu.memory_space<vmem>>, vector<1x64xf32>
    %4 = vector.broadcast %3 : vector<1x64xf32> to vector<8x64xf32>
    %5 = arith.addf %2, %4 : vector<8x64xf32>
    %cst_5 = arith.constant dense<0.000000e+00> : vector<8xf32>
    %6 = vector.multi_reduction <add>, %5, %cst_5 [1] : vector<8x64xf32> to vector<8xf32>
    %7 = vector.shape_cast %6 : vector<8xf32> to vector<8x1xf32>
    %8 = arith.mulf %5, %5 : vector<8x64xf32>
    %cst_6 = arith.constant dense<0.000000e+00> : vector<8xf32>
    %9 = vector.multi_reduction <add>, %8, %cst_6 [1] : vector<8x64xf32> to vector<8xf32>
    %10 = vector.shape_cast %9 : vector<8xf32> to vector<8x1xf32>
    %c0_7 = arith.constant 0 : index
    %c0_8 = arith.constant 0 : index
    %11 = vector.load %arg4[%c0_7, %c0_8] : memref<4x8xf32, #tpu.memory_space<vmem>>, vector<4x8xf32>
    %cst_9 = arith.constant dense<0.000000e+00> : vector<4x1xf32>
    %12 = tpu.matmul %11, %7, %cst_9 {dimension_numbers = #tpu.dot_dimension_numbers<[1], [0], [0], [1], [0, 0, 1, 1], [], []>} : vector<4x8xf32>, vector<8x1xf32>, vector<4x1xf32> -> vector<4x1xf32>
    %c0_10 = arith.constant 0 : index
    %c0_11 = arith.constant 0 : index
    %13 = vector.load %arg4[%c0_10, %c0_11] : memref<4x8xf32, #tpu.memory_space<vmem>>, vector<4x8xf32>
    %cst_12 = arith.constant dense<0.000000e+00> : vector<4x1xf32>
    %14 = tpu.matmul %13, %10, %cst_12 {dimension_numbers = #tpu.dot_dimension_numbers<[1], [0], [0], [1], [0, 0, 1, 1], [], []>} : vector<4x8xf32>, vector<8x1xf32>, vector<4x1xf32> -> vector<4x1xf32>
    %cst_13 = arith.constant 7.812500e-03 : f32
    %15 = vector.broadcast %cst_13 : f32 to vector<4x1xf32>
    %16 = arith.mulf %12, %15 : vector<4x1xf32>
    %cst_14 = arith.constant 7.812500e-03 : f32
    %17 = vector.broadcast %cst_14 : f32 to vector<4x1xf32>
    %18 = arith.mulf %14, %17 : vector<4x1xf32>
    %19 = arith.mulf %16, %16 : vector<4x1xf32>
    %20 = arith.subf %18, %19 : vector<4x1xf32>
    %cst_15 = arith.constant 0.000000e+00 : f32
    %21 = vector.broadcast %cst_15 : f32 to vector<4x1xf32>
    %22 = arith.maximumf %20, %21 : vector<4x1xf32>
    %cst_16 = arith.constant 9.99999974E-6 : f32
    %23 = vector.broadcast %cst_16 : f32 to vector<4x1xf32>
    %24 = arith.addf %22, %23 : vector<4x1xf32>
    %25 = math.rsqrt %24 : vector<4x1xf32>
    %c0_17 = arith.constant 0 : index
    %c0_18 = arith.constant 0 : index
    %26 = vector.load %arg6[%c0_17, %c0_18] : memref<4x1xf32, #tpu.memory_space<vmem>>, vector<4x1xf32>
    %27 = arith.mulf %25, %26 : vector<4x1xf32>
    %c0_19 = arith.constant 0 : index
    %c0_20 = arith.constant 0 : index
    %28 = vector.load %arg7[%c0_19, %c0_20] : memref<4x1xf32, #tpu.memory_space<vmem>>, vector<4x1xf32>
    %29 = arith.mulf %16, %27 : vector<4x1xf32>
    %30 = arith.subf %28, %29 : vector<4x1xf32>
    %c0_21 = arith.constant 0 : index
    %c0_22 = arith.constant 0 : index
    %31 = vector.load %arg5[%c0_21, %c0_22] : memref<8x4xf32, #tpu.memory_space<vmem>>, vector<8x4xf32>
    %cst_23 = arith.constant dense<0.000000e+00> : vector<8x1xf32>
    %32 = tpu.matmul %31, %27, %cst_23 {dimension_numbers = #tpu.dot_dimension_numbers<[1], [0], [0], [1], [0, 0, 1, 1], [], []>} : vector<8x4xf32>, vector<4x1xf32>, vector<8x1xf32> -> vector<8x1xf32>
    %c0_24 = arith.constant 0 : index
    %c0_25 = arith.constant 0 : index
    %33 = vector.load %arg5[%c0_24, %c0_25] : memref<8x4xf32, #tpu.memory_space<vmem>>, vector<8x4xf32>
    %cst_26 = arith.constant dense<0.000000e+00> : vector<8x1xf32>
    %34 = tpu.matmul %33, %30, %cst_26 {dimension_numbers = #tpu.dot_dimension_numbers<[1], [0], [0], [1], [0, 0, 1, 1], [], []>} : vector<8x4xf32>, vector<4x1xf32>, vector<8x1xf32> -> vector<8x1xf32>
    %35 = vector.broadcast %32 : vector<8x1xf32> to vector<8x64xf32>
    %36 = arith.mulf %5, %35 : vector<8x64xf32>
    %37 = vector.broadcast %34 : vector<8x1xf32> to vector<8x64xf32>
    %38 = arith.addf %36, %37 : vector<8x64xf32>
    %c0_27 = arith.constant 0 : index
    %c0_28 = arith.constant 0 : index
    %39 = vector.load %arg8[%c0_27, %c0_28] : memref<8x64xf32, #tpu.memory_space<vmem>>, vector<8x64xf32>
    tpu.vector_store %arg8[%c0_27, %c0_28], %38 {strides = array<i32>} : memref<8x64xf32, #tpu.memory_space<vmem>>, vector<8x64xf32>,
    return
  }
  func.func @transform_0(%arg0: i32) -> (i32, i32) {
    %c0_i32 = arith.constant 0 : i32
    %c0_i32_0 = arith.constant 0 : i32
    %c0_i32_1 = arith.constant 0 : i32
    return %c0_i32, %c0_i32_0 : i32, i32
  }
  func.func @transform_1(%arg0: i32) -> (i32, i32) {
    %c0_i32 = arith.constant 0 : i32
    %c0_i32_0 = arith.constant 0 : i32
    %c0_i32_1 = arith.constant 0 : i32
    return %c0_i32, %c0_i32_0 : i32, i32
  }
  func.func @transform_2(%arg0: i32) -> (i32, i32) {
    %c0_i32 = arith.constant 0 : i32
    %c0_i32_0 = arith.constant 0 : i32
    %c0_i32_1 = arith.constant 0 : i32
    return %c0_i32, %c0_i32_0 : i32, i32
  }
  func.func @transform_3(%arg0: i32) -> (i32, i32) {
    %c0_i32 = arith.constant 0 : i32
    %c0_i32_0 = arith.constant 0 : i32
    %c0_i32_1 = arith.constant 0 : i32
    return %c0_i32, %c0_i32_0 : i32, i32
  }
  func.func @transform_4(%arg0: i32) -> (i32, i32) {
    %c0_i32 = arith.constant 0 : i32
    %c0_i32_0 = arith.constant 0 : i32
    %c0_i32_1 = arith.constant 0 : i32
    return %c0_i32, %c0_i32_0 : i32, i32
  }
  func.func @transform_5(%arg0: i32) -> (i32, i32) {
    %c0_i32 = arith.constant 0 : i32
    %c0_i32_0 = arith.constant 0 : i32
    %c0_i32_1 = arith.constant 0 : i32
    return %c0_i32, %c0_i32_0 : i32, i32
  }
  func.func @transform_6(%arg0: i32) -> (i32, i32) {
    %c0_i32 = arith.constant 0 : i32
    %c0_i32_0 = arith.constant 0 : i32
    %c0_i32_1 = arith.constant 0 : i32
    return %c0_i32, %c0_i32_0 : i32, i32
  }
  func.func @transform_7(%arg0: i32) -> (i32, i32) {
    %c0_i32 = arith.constant 0 : i32
    %c0_i32_0 = arith.constant 0 : i32
    %c0_i32_1 = arith.constant 0 : i32
    return %c0_i32, %c0_i32_0 : i32, i32
  }
}

</mosaic_0001>

<bundles_post_ra>
// kernel: tpu_custom_call.1
= control target key start
LH: loop header
LB: loop body
LE: loop exit
PB: predicated region body
PF: predicated region fallthrough
CT: control target
= control target key end

     0   :  { %12 = vsyncpa [#allocation3], 0  ;;  %s658_s0 = inlined_call_operand.vmem [shape: f32[8,32], index: 0, kind: input, shape index: {}]   ;;  %s659_s1 = inlined_call_operand.hbm [shape: f32[32,64], index: 1, kind: input, shape index: {}]   ;;  %s660_s2 = inlined_call_operand.vmem [shape: f32[1,64], index: 2, kind: input, shape index: {}]   ;;  %s661_s3 = inlined_call_operand.vmem [shape: f32[4,8], index: 3, kind: input, shape index: {}]   ;;  %s662_s4 = inlined_call_operand.vmem [shape: f32[8,4], index: 4, kind: input, shape index: {}]   ;;  %s663_s5 = inlined_call_operand.vmem [shape: f32[4,1], index: 5, kind: input, shape index: {}]   ;;  %s664_s6 = inlined_call_operand.vmem [shape: f32[4,1], index: 6, kind: input, shape index: {}]   ;;  %s665_s7 = inlined_call_operand.hbm [shape: f32[8,64], index: 7, kind: output, shape index: {}]  }
   0x1   :  { %13 = vsyncpa [#allocation4], 0  ;;  %s579_s24 = smov [#allocation2]  }
   0x2   :  { %s21_s25 = sshll.u32 %s579_s24, 4  ;;  %s22_s25 = int_to_ptr.vmem [resolvable:$true] %s21_s25 }
   0x3   :  { %s543_s26 = scalar_lea.vmem %s22_s25, 512  ;;  %p548_p1 = scmp.lt.s32.totalorder %s22_s25, %s22_s25 }
   0x4   :  { %p544_p0 = scmp.ne.s32.totalorder %s22_s25, %s543_s26  ;;  %p549_p2 = scmp.lt.s32.totalorder %s543_s26, %s543_s26 }
   0x6   :  { %p550_p3 = por %p549_p2, %p548_p1 }
   0x8   :  { %p551_p4 = pnand %p550_p3, %p544_p0 }
   0xa   :  { %554 = shalt.err (!%p551_p4)
}
   0xb   :  { %s580_s27 = smov 128   ;;  %s581_s28 = smov 8  }
   0xc   :  { %27 = dma.hbm_to_vmem [thread:$0]  %s659_s1, 512, %s22_s25, [#allocation3], %s580_s27, %s580_s27, %s581_s28  }
   0xd   :  { %575 = dma.done.wait [#allocation3], 512  }
   0xe   :  { %576 = vsyncadd [#allocation3], 4294966784  ;;  %v582_v0 = vmov 0.0   ;;  %vm583_vm0 = vmmov 0   ;;  %v45_v1 = vld [vmem:[#allocation2 + $0x18] sm:$0xff]  ;;  %v44_v2 = vld [vmem:[#allocation2 + $0x10] sm:$0xff] }
   0xf   :  { %493 = vmatprep.subr.mxu0 %v582_v0  ;;  %501 = vmatprep.mubr.msk.f32.mxu0 %vm583_vm0, %v582_v0  ;;  %v43_v3 = vld [vmem:[#allocation2 + $0x8] sm:$0xff]  ;;  %v42_v4 = vld [vmem:[#allocation2] sm:$0xff]  ;;  %vm53_vm1 = vcmask 261120   ;;  %vm127_vm2 = vcmask 523264   ;;  %vm136_vm3 = vcmask 64512   ;;  %v584_v16 = vmov 0  }
  0x10   :  { %504 = vmatprep.subr.mxu1 %v582_v0  ;;  %506 = vmatprep.mubr.msk.f32.mxu1 %vm583_vm0, %v582_v0  ;;  %v41_v5 = vld [vmem:[%s658_s0] sm:$0xff]  ;;  %vm297_vm4 = vcmask 1043456   ;;  %vm293_vm5 = vcmask 31744  }
  0x11   :  { %494 = vmatpush3.msra.mxu0 %v45_v1  ;;  %v472_v6 = vld [vmem:[%s660_s2] ss:$0 sm:$0xff]  ;;  %531 = vset.pattern.permute.xlu1 %v584_v16 }
  0x12   :  { %495 = vmatprep.subr.mxu0 %v582_v0  ;;  %v135_v13 = vld [vmem:[%s661_s3] sm:$0xf]  ;;  %532 = vset.pattern.permute.xlu0 %v584_v16 }
  0x13   :  { %496 = vmatpush3.msra.mxu0 %v44_v2  ;;  %v287_v27 = vld [vmem:[%s663_s5] sm:$0xf]  ;;  %s585_s5 = smov [#allocation5]  }
  0x14   :  { %497 = vmatprep.subr.mxu0 %v582_v0  ;;  %v292_v30 = vld [vmem:[%s662_s4] sm:$0xff]  ;;  %s463_s4 = sshll.u32 %s585_s5, 4  ;;  %s464_s4 = int_to_ptr.vmem [resolvable:$true] %s463_s4 }
  0x15   :  { %498 = vmatpush3.msra.mxu0 %v43_v3  ;;  %v289_v31 = vld [vmem:[%s664_s6] sm:$0xf]  ;;  %s555_s6 = scalar_lea.vmem %s464_s4, 128  ;;  %p560_p6 = scmp.lt.s32.totalorder %s464_s4, %s464_s4 }
  0x16   :  { %499 = vmatprep.subr.mxu0 %v582_v0  ;;  %p556_p5 = scmp.ne.s32.totalorder %s464_s4, %s555_s6  ;;  %p561_p7 = scmp.lt.s32.totalorder %s555_s6, %s555_s6 }
  0x17   :  { %500 = vmatpush3.msra.mxu0 %v42_v4 }
  0x18   :  { %502 = vmatmul.mubr.msk.f32.vlgmr.msra.gmra.mxu0 %vm53_vm1, %v41_v5  ;;  %519 = vmatprep.subr.mxu0 %v582_v0  ;;  %p562_p8 = por %p561_p7, %p560_p6 }
  0x19   :  { %521 = vmatprep.mubr.msk.f32.mxu0 %vm583_vm0, %v582_v0 }
  0x1a   :  { %p563_p9 = pnand %p562_p8, %p556_p5 }
  0xd8   :  { %v123_v7 = vpop.f32.mrf.mxu0 }
  0xd9   :  { %v124_v8 = vadd.f32 %v472_v6, %v123_v7 }
  0xda   :  { %v503_v9 = vpop.f32.mrf.mxu0 }
  0xdb   :  { %v128_v10 = vsel %vm127_vm2, %v124_v8, 0.0  ;;  %v131_v11 = vmul.f32 %v124_v8, %v124_v8 }
  0xdc   :  { %129 = vadd.xlane.f32.xlu0 %v128_v10 }
  0xdd   :  { %v132_v12 = vsel %vm127_vm2, %v131_v11, 0.0 }
  0xe0   :  { %133 = vadd.xlane.f32.xlu0 %v132_v12 }
 0x165   :  { %v130_v14 = vpop.xlane.xlu0 %129 }
 0x166   :  { %505 = vmatpush3.msra.mxu1 %v130_v14 }
 0x167   :  { %507 = vmatmul.mubr.msk.f32.vlgmr.msra.gmra.mxu1 %vm136_vm3, %v135_v13  ;;  %509 = vmatprep.subr.mxu1 %v582_v0 }
 0x168   :  { %511 = vmatprep.mubr.msk.f32.mxu1 %vm583_vm0, %v582_v0 }
 0x169   :  { %v134_v15 = vpop.xlane.xlu0 %133 }
 0x16a   :  { %510 = vmatpush3.msra.mxu1 %v134_v15 }
 0x16b   :  { %512 = vmatmul.mubr.msk.f32.vlgmr.msra.gmra.mxu1 %vm136_vm3, %v135_v13  ;;  %514 = vmatprep.subr.mxu1 %v582_v0 }
 0x16c   :  { %516 = vmatprep.mubr.msk.f32.mxu1 %vm583_vm0, %v582_v0 }
 0x227   :  { %v206_v17 = vpop.f32.mrf.mxu1 }
 0x228   :  { %v280_v18 = vmul.f32 0.0078125, %v206_v17 }
 0x229   :  { %v508_v19 = vpop.f32.mrf.mxu1 }
 0x22a   :  { %v282_v21 = vmul.f32 %v280_v18, %v280_v18 }
 0x22b   :  { %v276_v20 = vpop.f32.mrf.mxu1 }
 0x22c   :  { %v281_v22 = vmul.f32 0.0078125, %v276_v20 }
 0x22d   :  { %v513_v23 = vpop.f32.mrf.mxu1 }
 0x22e   :  { %v283_v24 = vsub.f32 %v281_v22, %v282_v21 }
 0x230   :  { %v284_v25 = vmax.f32 %v283_v24, 0.0 }
 0x232   :  { %v285_v26 = vadd.f32 1e-05, %v284_v25 }
 0x234   :  { %533 = vrsqrt.f32 %v285_v26 }
 0x241   :  { %v534_v28 = vpop.eup %533 }
 0x242   :  { %v288_v29 = vmul.f32 %v534_v28, %v287_v27 }
 0x244   :  { %515 = vmatpush3.msk.msra.mxu1 %vm297_vm4, %v288_v29  ;;  %v290_v32 = vmul.f32 %v288_v29, %v280_v18 }
 0x245   :  { %517 = vmatmul.mubr.msk.f32.vlgmr.msra.gmra.mxu1 %vm293_vm5, %v292_v30 }
 0x246   :  { %v291_v33 = vsub.f32 %v289_v31, %v290_v32 }
 0x248   :  { %520 = vmatpush3.msk.msra.mxu0 %vm297_vm4, %v291_v33 }
 0x249   :  { %522 = vmatmul.mubr.msk.f32.vlgmr.msra.gmra.mxu0 %vm293_vm5, %v292_v30 }
 0x305   :  { %v367_v34 = vpop.f32.mrf.mxu1 }
 0x306   :  { %446 = vperm.xlu1 %531, %v367_v34  }
 0x307   :  { %v518_v35 = vpop.f32.mrf.mxu1 }
 0x309   :  { %v440_v36 = vpop.f32.mrf.mxu0 }
 0x30a   :  { %452 = vperm.xlu1 %531, %v440_v36  }
 0x30b   :  { %v523_v37 = vpop.f32.mrf.mxu0 }
 0x381   :  { %v447_v38 = vpop.permute.xlu1 %446 }
 0x382   :  { %v449_v39 = vmul.f32 %v447_v38, %v124_v8 }
 0x385   :  { %v453_v40 = vpop.permute.xlu1 %452 }
 0x386   :  { %v455_v41 = vadd.f32 %v453_v40, %v449_v39 }
 0x388   :  { %456 = vst.msk [vmem:[#allocation5] sm:$0xff] %vm127_vm2, %v455_v41 }
 0x389   :  { %566 = shalt.err (!%p563_p9)
}
 0x38a   :  { %466 = dma.vmem_to_hbm [thread:$0]  %s464_s4, 128, %s665_s7, [#allocation4]  }
 0x38b   :  { %577 = dma.done.wait [#allocation4], 128  }
 0x38c   :  { %578 = vsyncadd [#allocation4], 4294967168 }
 0x38d   :  { %470 = vsyncpa [#allocation3], 1 }
 0x38e   :  { %471 = vsyncpa [#allocation4], 1 }

</bundles_post_ra>
